<compile_context>
chip_gen: v7x
topology: tpu7x:2x2x1
jax: 0.10.0
libtpu: 0.0.40
codegen_flags: <defaults>
</compile_context>

<pallas_src>
import math
import numpy as np
import jax
import jax.numpy as jnp
from jax import lax
from jax.experimental import pallas as pl
from jax.experimental.pallas import tpu as pltpu


def _embedding_gather_kernel(tok_ref, emb_hbm, pe_ref, out_ref, gbuf, sems):
    """One grid step gathers `row_tile` embedding rows from the HBM table.

    tok_ref : (N,)   int32  SMEM (scalar-prefetched flattened token ids)
    emb_hbm : (V, D) f32    HBM ref (memory_space=pl.ANY; never staged whole)
    pe_ref  : (T, D) f32    VMEM tile of the positional-encoding buffer
    out_ref : (T, D) f32    VMEM output tile (lane-dense: full D on lanes)
    gbuf    : (T, D) f32    VMEM scratch for the gathered rows
    sems    : (T,)          DMA semaphores, one per gathered row
    """
    t_rows = out_ref.shape[0]
    base = pl.program_id(0) * t_rows

    # Issue all row gathers first so the per-row DMAs overlap each other.
    for r in range(t_rows):
        tid = tok_ref[base + r]
        pltpu.make_async_copy(
            emb_hbm.at[pl.ds(tid, 1), :],
            gbuf.at[pl.ds(r, 1), :],
            sems.at[r],
        ).start()

    # Wait for every row (only the descriptor shape matters for the wait).
    for r in range(t_rows):
        pltpu.make_async_copy(
            emb_hbm.at[pl.ds(0, 1), :],
            gbuf.at[pl.ds(r, 1), :],
            sems.at[r],
        ).wait()

    # Fused epilogue: add positional encoding, write the lane-dense tile.
    out_ref[...] = gbuf[...] + pe_ref[...]


def transformer_embedding(tokens, emb_table, pe_table, *, row_tile=8):
    """tokens: (B, S) int32, emb_table: (V, D) f32, pe_table: (max_len, D) f32.

    Returns (B, S, D) f32 = emb_table[tokens] + pe_table[:S][None].
    """
    B, S = tokens.shape
    V, D = emb_table.shape
    N = B * S
    assert S % row_tile == 0, "row_tile must divide the sequence length"
    n_s_tiles = S // row_tile
    n_tiles = N // row_tile

    tok_flat = tokens.reshape(N).astype(jnp.int32)

    out_flat = pl.pallas_call(
        _embedding_gather_kernel,
        out_shape=jax.ShapeDtypeStruct((N, D), jnp.float32),
        grid_spec=pltpu.PrefetchScalarGridSpec(
            num_scalar_prefetch=1,
            grid=(n_tiles,),
            in_specs=[
                # Embedding table stays in HBM; rows are gathered manually.
                pl.BlockSpec(memory_space=pl.ANY),
                # PE tile for this step: positions (i*row_tile .. +row_tile) mod S.
                pl.BlockSpec((row_tile, D), lambda i, tok: (i % n_s_tiles, 0)),
            ],
            out_specs=pl.BlockSpec((row_tile, D), lambda i, tok: (i, 0)),
            scratch_shapes=[
                pltpu.VMEM((row_tile, D), jnp.float32),      # gathered rows
                pltpu.SemaphoreType.DMA((row_tile,)),        # one sem per row DMA
            ],
        ),
        compiler_params=pltpu.CompilerParams(
            dimension_semantics=("parallel",),
        ),
    )(tok_flat, emb_table, pe_table)

    return out_flat.reshape(B, S, D)


def make_positional_encoding(d_model, max_len):
    """Exactly mirrors Positionnal_encoding.__init__ (note: log(10.0), not 10000,
    faithfully reproducing the source)."""
    pe = np.zeros((max_len, d_model), dtype=np.float32)
    position = np.arange(0, max_len, dtype=np.float32)[:, None]
    divterm = np.exp(np.arange(0, d_model, 2, dtype=np.float32)
                     * -(math.log(10.0) / d_model))
    pe[:, 0::2] = np.sin(position * divterm)
    pe[:, 1::2] = np.cos(position * divterm)
    return jnp.asarray(pe)


if __name__ == "__main__":
    # Small shapes consistent with the module's forward.
    vocab_size = 64
    d_model = 128          # multiple of 128 -> lane-dense output tiles
    max_len = 64
    batch = 2
    seq_len = 16

    key = jax.random.PRNGKey(0)
    k_emb, k_tok = jax.random.split(key)

    # nn.Embedding default init: N(0, 1)
    emb_table = jax.random.normal(k_emb, (vocab_size, d_model), dtype=jnp.float32)
    tokens = jax.random.randint(k_tok, (batch, seq_len), 0, vocab_size, dtype=jnp.int32)
    pe_table = make_positional_encoding(d_model, max_len)

    out = transformer_embedding(tokens, emb_table, pe_table, row_tile=8)
    out = jax.block_until_ready(out)

    # Pure-JAX reference (intended semantics): embedding lookup + PE, dropout=identity.
    ref = jnp.take(emb_table, tokens, axis=0) + pe_table[:seq_len, :][None, :, :]
    assert out.shape == (batch, seq_len, d_model)
    np.testing.assert_allclose(np.asarray(out), np.asarray(ref), rtol=1e-6, atol=1e-6)

    print("KERNEL_OK")
</pallas_src>

<mosaic_0001>
module attributes {stable_mosaic.version = 11 : i64} {
  func.func @_embedding_gather_kernel(%arg0: i32, %arg1: memref<32xi32, #tpu.memory_space<smem>>, %arg2: memref<64x128xf32, #tpu.memory_space<any>>, %arg3: memref<8x128xf32, #tpu.memory_space<vmem>>, %arg4: memref<8x128xf32, #tpu.memory_space<vmem>>, %arg5: memref<8x128xf32, #tpu.memory_space<vmem>>, %arg6: memref<8x!tpu.dma_semaphore, #tpu.memory_space<semaphore_mem>>) attributes {dimension_semantics = [#tpu.dimension_semantics<parallel>], iteration_bounds = array<i64: 4>, scalar_prefetch = 1 : i64, scratch_operands = 2 : i64, tpu.core_type = #tpu.core_type<tc>, window_params = [{}, {transform_indices = @transform_1, window_bounds = array<i64: 8, 128>}, {transform_indices = @transform_2, window_bounds = array<i64: 8, 128>}]} {
    %c8_i32 = arith.constant 8 : i32
    %0 = arith.muli %arg0, %c8_i32 : i32
    %c0_i32 = arith.constant 0 : i32
    %1 = arith.addi %0, %c0_i32 : i32
    %2 = arith.index_cast %1 : i32 to index
    %3 = memref.load %arg1[%2] : memref<32xi32, #tpu.memory_space<smem>>
    %c0_i32_0 = arith.constant 0 : i32
    %c0_i32_1 = arith.constant 0 : i32
    %4 = tpu.memref_slice %arg2[%3, %c0_i32_1] : memref<64x128xf32, #tpu.memory_space<any>> -> memref<1x128xf32, #tpu.memory_space<any>>
    %c0_i32_2 = arith.constant 0 : i32
    %c0_i32_3 = arith.constant 0 : i32
    %5 = tpu.memref_slice %arg5[%c0_i32_2, %c0_i32_3] : memref<8x128xf32, #tpu.memory_space<vmem>> -> memref<1x128xf32, #tpu.memory_space<vmem>>
    %6 = tpu.memref_slice %arg6[%c0_i32_0] : memref<8x!tpu.dma_semaphore, #tpu.memory_space<semaphore_mem>> -> memref<1x!tpu.dma_semaphore, #tpu.memory_space<semaphore_mem>>
    %7 = tpu.memref_squeeze %6 : memref<1x!tpu.dma_semaphore, #tpu.memory_space<semaphore_mem>> -> memref<!tpu.dma_semaphore, #tpu.memory_space<semaphore_mem>>
    tpu.enqueue_dma source(%4 : memref<1x128xf32, #tpu.memory_space<any>>) target(%5 : memref<1x128xf32, #tpu.memory_space<vmem>>) target_semaphore(%7 : memref<!tpu.dma_semaphore, #tpu.memory_space<semaphore_mem>>)
    %c1_i32 = arith.constant 1 : i32
    %8 = arith.addi %0, %c1_i32 : i32
    %9 = arith.index_cast %8 : i32 to index
    %10 = memref.load %arg1[%9] : memref<32xi32, #tpu.memory_space<smem>>
    %c1_i32_4 = arith.constant 1 : i32
    %c0_i32_5 = arith.constant 0 : i32
    %11 = tpu.memref_slice %arg2[%10, %c0_i32_5] : memref<64x128xf32, #tpu.memory_space<any>> -> memref<1x128xf32, #tpu.memory_space<any>>
    %c1_i32_6 = arith.constant 1 : i32
    %c0_i32_7 = arith.constant 0 : i32
    %12 = tpu.memref_slice %arg5[%c1_i32_6, %c0_i32_7] : memref<8x128xf32, #tpu.memory_space<vmem>> -> memref<1x128xf32, #tpu.memory_space<vmem>>
    %13 = tpu.memref_slice %arg6[%c1_i32_4] : memref<8x!tpu.dma_semaphore, #tpu.memory_space<semaphore_mem>> -> memref<1x!tpu.dma_semaphore, #tpu.memory_space<semaphore_mem>>
    %14 = tpu.memref_squeeze %13 : memref<1x!tpu.dma_semaphore, #tpu.memory_space<semaphore_mem>> -> memref<!tpu.dma_semaphore, #tpu.memory_space<semaphore_mem>>
    tpu.enqueue_dma source(%11 : memref<1x128xf32, #tpu.memory_space<any>>) target(%12 : memref<1x128xf32, #tpu.memory_space<vmem>>) target_semaphore(%14 : memref<!tpu.dma_semaphore, #tpu.memory_space<semaphore_mem>>)
    %c2_i32 = arith.constant 2 : i32
    %15 = arith.addi %0, %c2_i32 : i32
    %16 = arith.index_cast %15 : i32 to index
    %17 = memref.load %arg1[%16] : memref<32xi32, #tpu.memory_space<smem>>
    %c2_i32_8 = arith.constant 2 : i32
    %c0_i32_9 = arith.constant 0 : i32
    %18 = tpu.memref_slice %arg2[%17, %c0_i32_9] : memref<64x128xf32, #tpu.memory_space<any>> -> memref<1x128xf32, #tpu.memory_space<any>>
    %c2_i32_10 = arith.constant 2 : i32
    %c0_i32_11 = arith.constant 0 : i32
    %19 = tpu.memref_slice %arg5[%c2_i32_10, %c0_i32_11] : memref<8x128xf32, #tpu.memory_space<vmem>> -> memref<1x128xf32, #tpu.memory_space<vmem>>
    %20 = tpu.memref_slice %arg6[%c2_i32_8] : memref<8x!tpu.dma_semaphore, #tpu.memory_space<semaphore_mem>> -> memref<1x!tpu.dma_semaphore, #tpu.memory_space<semaphore_mem>>
    %21 = tpu.memref_squeeze %20 : memref<1x!tpu.dma_semaphore, #tpu.memory_space<semaphore_mem>> -> memref<!tpu.dma_semaphore, #tpu.memory_space<semaphore_mem>>
    tpu.enqueue_dma source(%18 : memref<1x128xf32, #tpu.memory_space<any>>) target(%19 : memref<1x128xf32, #tpu.memory_space<vmem>>) target_semaphore(%21 : memref<!tpu.dma_semaphore, #tpu.memory_space<semaphore_mem>>)
    %c3_i32 = arith.constant 3 : i32
    %22 = arith.addi %0, %c3_i32 : i32
    %23 = arith.index_cast %22 : i32 to index
    %24 = memref.load %arg1[%23] : memref<32xi32, #tpu.memory_space<smem>>
    %c3_i32_12 = arith.constant 3 : i32
    %c0_i32_13 = arith.constant 0 : i32
    %25 = tpu.memref_slice %arg2[%24, %c0_i32_13] : memref<64x128xf32, #tpu.memory_space<any>> -> memref<1x128xf32, #tpu.memory_space<any>>
    %c3_i32_14 = arith.constant 3 : i32
    %c0_i32_15 = arith.constant 0 : i32
    %26 = tpu.memref_slice %arg5[%c3_i32_14, %c0_i32_15] : memref<8x128xf32, #tpu.memory_space<vmem>> -> memref<1x128xf32, #tpu.memory_space<vmem>>
    %27 = tpu.memref_slice %arg6[%c3_i32_12] : memref<8x!tpu.dma_semaphore, #tpu.memory_space<semaphore_mem>> -> memref<1x!tpu.dma_semaphore, #tpu.memory_space<semaphore_mem>>
    %28 = tpu.memref_squeeze %27 : memref<1x!tpu.dma_semaphore, #tpu.memory_space<semaphore_mem>> -> memref<!tpu.dma_semaphore, #tpu.memory_space<semaphore_mem>>
    tpu.enqueue_dma source(%25 : memref<1x128xf32, #tpu.memory_space<any>>) target(%26 : memref<1x128xf32, #tpu.memory_space<vmem>>) target_semaphore(%28 : memref<!tpu.dma_semaphore, #tpu.memory_space<semaphore_mem>>)
    %c4_i32 = arith.constant 4 : i32
    %29 = arith.addi %0, %c4_i32 : i32
    %30 = arith.index_cast %29 : i32 to index
    %31 = memref.load %arg1[%30] : memref<32xi32, #tpu.memory_space<smem>>
    %c4_i32_16 = arith.constant 4 : i32
    %c0_i32_17 = arith.constant 0 : i32
    %32 = tpu.memref_slice %arg2[%31, %c0_i32_17] : memref<64x128xf32, #tpu.memory_space<any>> -> memref<1x128xf32, #tpu.memory_space<any>>
    %c4_i32_18 = arith.constant 4 : i32
    %c0_i32_19 = arith.constant 0 : i32
    %33 = tpu.memref_slice %arg5[%c4_i32_18, %c0_i32_19] : memref<8x128xf32, #tpu.memory_space<vmem>> -> memref<1x128xf32, #tpu.memory_space<vmem>>
    %34 = tpu.memref_slice %arg6[%c4_i32_16] : memref<8x!tpu.dma_semaphore, #tpu.memory_space<semaphore_mem>> -> memref<1x!tpu.dma_semaphore, #tpu.memory_space<semaphore_mem>>
    %35 = tpu.memref_squeeze %34 : memref<1x!tpu.dma_semaphore, #tpu.memory_space<semaphore_mem>> -> memref<!tpu.dma_semaphore, #tpu.memory_space<semaphore_mem>>
    tpu.enqueue_dma source(%32 : memref<1x128xf32, #tpu.memory_space<any>>) target(%33 : memref<1x128xf32, #tpu.memory_space<vmem>>) target_semaphore(%35 : memref<!tpu.dma_semaphore, #tpu.memory_space<semaphore_mem>>)
    %c5_i32 = arith.constant 5 : i32
    %36 = arith.addi %0, %c5_i32 : i32
    %37 = arith.index_cast %36 : i32 to index
    %38 = memref.load %arg1[%37] : memref<32xi32, #tpu.memory_space<smem>>
    %c5_i32_20 = arith.constant 5 : i32
    %c0_i32_21 = arith.constant 0 : i32
    %39 = tpu.memref_slice %arg2[%38, %c0_i32_21] : memref<64x128xf32, #tpu.memory_space<any>> -> memref<1x128xf32, #tpu.memory_space<any>>
    %c5_i32_22 = arith.constant 5 : i32
    %c0_i32_23 = arith.constant 0 : i32
    %40 = tpu.memref_slice %arg5[%c5_i32_22, %c0_i32_23] : memref<8x128xf32, #tpu.memory_space<vmem>> -> memref<1x128xf32, #tpu.memory_space<vmem>>
    %41 = tpu.memref_slice %arg6[%c5_i32_20] : memref<8x!tpu.dma_semaphore, #tpu.memory_space<semaphore_mem>> -> memref<1x!tpu.dma_semaphore, #tpu.memory_space<semaphore_mem>>
    %42 = tpu.memref_squeeze %41 : memref<1x!tpu.dma_semaphore, #tpu.memory_space<semaphore_mem>> -> memref<!tpu.dma_semaphore, #tpu.memory_space<semaphore_mem>>
    tpu.enqueue_dma source(%39 : memref<1x128xf32, #tpu.memory_space<any>>) target(%40 : memref<1x128xf32, #tpu.memory_space<vmem>>) target_semaphore(%42 : memref<!tpu.dma_semaphore, #tpu.memory_space<semaphore_mem>>)
    %c6_i32 = arith.constant 6 : i32
    %43 = arith.addi %0, %c6_i32 : i32
    %44 = arith.index_cast %43 : i32 to index
    %45 = memref.load %arg1[%44] : memref<32xi32, #tpu.memory_space<smem>>
    %c6_i32_24 = arith.constant 6 : i32
    %c0_i32_25 = arith.constant 0 : i32
    %46 = tpu.memref_slice %arg2[%45, %c0_i32_25] : memref<64x128xf32, #tpu.memory_space<any>> -> memref<1x128xf32, #tpu.memory_space<any>>
    %c6_i32_26 = arith.constant 6 : i32
    %c0_i32_27 = arith.constant 0 : i32
    %47 = tpu.memref_slice %arg5[%c6_i32_26, %c0_i32_27] : memref<8x128xf32, #tpu.memory_space<vmem>> -> memref<1x128xf32, #tpu.memory_space<vmem>>
    %48 = tpu.memref_slice %arg6[%c6_i32_24] : memref<8x!tpu.dma_semaphore, #tpu.memory_space<semaphore_mem>> -> memref<1x!tpu.dma_semaphore, #tpu.memory_space<semaphore_mem>>
    %49 = tpu.memref_squeeze %48 : memref<1x!tpu.dma_semaphore, #tpu.memory_space<semaphore_mem>> -> memref<!tpu.dma_semaphore, #tpu.memory_space<semaphore_mem>>
    tpu.enqueue_dma source(%46 : memref<1x128xf32, #tpu.memory_space<any>>) target(%47 : memref<1x128xf32, #tpu.memory_space<vmem>>) target_semaphore(%49 : memref<!tpu.dma_semaphore, #tpu.memory_space<semaphore_mem>>)
    %c7_i32 = arith.constant 7 : i32
    %50 = arith.addi %0, %c7_i32 : i32
    %51 = arith.index_cast %50 : i32 to index
    %52 = memref.load %arg1[%51] : memref<32xi32, #tpu.memory_space<smem>>
    %c7_i32_28 = arith.constant 7 : i32
    %c0_i32_29 = arith.constant 0 : i32
    %53 = tpu.memref_slice %arg2[%52, %c0_i32_29] : memref<64x128xf32, #tpu.memory_space<any>> -> memref<1x128xf32, #tpu.memory_space<any>>
    %c7_i32_30 = arith.constant 7 : i32
    %c0_i32_31 = arith.constant 0 : i32
    %54 = tpu.memref_slice %arg5[%c7_i32_30, %c0_i32_31] : memref<8x128xf32, #tpu.memory_space<vmem>> -> memref<1x128xf32, #tpu.memory_space<vmem>>
    %55 = tpu.memref_slice %arg6[%c7_i32_28] : memref<8x!tpu.dma_semaphore, #tpu.memory_space<semaphore_mem>> -> memref<1x!tpu.dma_semaphore, #tpu.memory_space<semaphore_mem>>
    %56 = tpu.memref_squeeze %55 : memref<1x!tpu.dma_semaphore, #tpu.memory_space<semaphore_mem>> -> memref<!tpu.dma_semaphore, #tpu.memory_space<semaphore_mem>>
    tpu.enqueue_dma source(%53 : memref<1x128xf32, #tpu.memory_space<any>>) target(%54 : memref<1x128xf32, #tpu.memory_space<vmem>>) target_semaphore(%56 : memref<!tpu.dma_semaphore, #tpu.memory_space<semaphore_mem>>)
    %c0_i32_32 = arith.constant 0 : i32
    %c0_i32_33 = arith.constant 0 : i32
    %c0_i32_34 = arith.constant 0 : i32
    %57 = tpu.memref_slice %arg2[%c0_i32_33, %c0_i32_34] : memref<64x128xf32, #tpu.memory_space<any>> -> memref<1x128xf32, #tpu.memory_space<any>>
    %c0_i32_35 = arith.constant 0 : i32
    %c0_i32_36 = arith.constant 0 : i32
    %58 = tpu.memref_slice %arg5[%c0_i32_35, %c0_i32_36] : memref<8x128xf32, #tpu.memory_space<vmem>> -> memref<1x128xf32, #tpu.memory_space<vmem>>
    %59 = tpu.memref_slice %arg6[%c0_i32_32] : memref<8x!tpu.dma_semaphore, #tpu.memory_space<semaphore_mem>> -> memref<1x!tpu.dma_semaphore, #tpu.memory_space<semaphore_mem>>
    %60 = tpu.memref_squeeze %59 : memref<1x!tpu.dma_semaphore, #tpu.memory_space<semaphore_mem>> -> memref<!tpu.dma_semaphore, #tpu.memory_space<semaphore_mem>>
    tpu.wait_dma2 semaphore(%60 : memref<!tpu.dma_semaphore, #tpu.memory_space<semaphore_mem>>) src(%57 : memref<1x128xf32, #tpu.memory_space<any>>) dst(%58 : memref<1x128xf32, #tpu.memory_space<vmem>>)
    %c1_i32_37 = arith.constant 1 : i32
    %c0_i32_38 = arith.constant 0 : i32
    %c0_i32_39 = arith.constant 0 : i32
    %61 = tpu.memref_slice %arg2[%c0_i32_38, %c0_i32_39] : memref<64x128xf32, #tpu.memory_space<any>> -> memref<1x128xf32, #tpu.memory_space<any>>
    %c1_i32_40 = arith.constant 1 : i32
    %c0_i32_41 = arith.constant 0 : i32
    %62 = tpu.memref_slice %arg5[%c1_i32_40, %c0_i32_41] : memref<8x128xf32, #tpu.memory_space<vmem>> -> memref<1x128xf32, #tpu.memory_space<vmem>>
    %63 = tpu.memref_slice %arg6[%c1_i32_37] : memref<8x!tpu.dma_semaphore, #tpu.memory_space<semaphore_mem>> -> memref<1x!tpu.dma_semaphore, #tpu.memory_space<semaphore_mem>>
    %64 = tpu.memref_squeeze %63 : memref<1x!tpu.dma_semaphore, #tpu.memory_space<semaphore_mem>> -> memref<!tpu.dma_semaphore, #tpu.memory_space<semaphore_mem>>
    tpu.wait_dma2 semaphore(%64 : memref<!tpu.dma_semaphore, #tpu.memory_space<semaphore_mem>>) src(%61 : memref<1x128xf32, #tpu.memory_space<any>>) dst(%62 : memref<1x128xf32, #tpu.memory_space<vmem>>)
    %c2_i32_42 = arith.constant 2 : i32
    %c0_i32_43 = arith.constant 0 : i32
    %c0_i32_44 = arith.constant 0 : i32
    %65 = tpu.memref_slice %arg2[%c0_i32_43, %c0_i32_44] : memref<64x128xf32, #tpu.memory_space<any>> -> memref<1x128xf32, #tpu.memory_space<any>>
    %c2_i32_45 = arith.constant 2 : i32
    %c0_i32_46 = arith.constant 0 : i32
    %66 = tpu.memref_slice %arg5[%c2_i32_45, %c0_i32_46] : memref<8x128xf32, #tpu.memory_space<vmem>> -> memref<1x128xf32, #tpu.memory_space<vmem>>
    %67 = tpu.memref_slice %arg6[%c2_i32_42] : memref<8x!tpu.dma_semaphore, #tpu.memory_space<semaphore_mem>> -> memref<1x!tpu.dma_semaphore, #tpu.memory_space<semaphore_mem>>
    %68 = tpu.memref_squeeze %67 : memref<1x!tpu.dma_semaphore, #tpu.memory_space<semaphore_mem>> -> memref<!tpu.dma_semaphore, #tpu.memory_space<semaphore_mem>>
    tpu.wait_dma2 semaphore(%68 : memref<!tpu.dma_semaphore, #tpu.memory_space<semaphore_mem>>) src(%65 : memref<1x128xf32, #tpu.memory_space<any>>) dst(%66 : memref<1x128xf32, #tpu.memory_space<vmem>>)
    %c3_i32_47 = arith.constant 3 : i32
    %c0_i32_48 = arith.constant 0 : i32
    %c0_i32_49 = arith.constant 0 : i32
    %69 = tpu.memref_slice %arg2[%c0_i32_48, %c0_i32_49] : memref<64x128xf32, #tpu.memory_space<any>> -> memref<1x128xf32, #tpu.memory_space<any>>
    %c3_i32_50 = arith.constant 3 : i32
    %c0_i32_51 = arith.constant 0 : i32
    %70 = tpu.memref_slice %arg5[%c3_i32_50, %c0_i32_51] : memref<8x128xf32, #tpu.memory_space<vmem>> -> memref<1x128xf32, #tpu.memory_space<vmem>>
    %71 = tpu.memref_slice %arg6[%c3_i32_47] : memref<8x!tpu.dma_semaphore, #tpu.memory_space<semaphore_mem>> -> memref<1x!tpu.dma_semaphore, #tpu.memory_space<semaphore_mem>>
    %72 = tpu.memref_squeeze %71 : memref<1x!tpu.dma_semaphore, #tpu.memory_space<semaphore_mem>> -> memref<!tpu.dma_semaphore, #tpu.memory_space<semaphore_mem>>
    tpu.wait_dma2 semaphore(%72 : memref<!tpu.dma_semaphore, #tpu.memory_space<semaphore_mem>>) src(%69 : memref<1x128xf32, #tpu.memory_space<any>>) dst(%70 : memref<1x128xf32, #tpu.memory_space<vmem>>)
    %c4_i32_52 = arith.constant 4 : i32
    %c0_i32_53 = arith.constant 0 : i32
    %c0_i32_54 = arith.constant 0 : i32
    %73 = tpu.memref_slice %arg2[%c0_i32_53, %c0_i32_54] : memref<64x128xf32, #tpu.memory_space<any>> -> memref<1x128xf32, #tpu.memory_space<any>>
    %c4_i32_55 = arith.constant 4 : i32
    %c0_i32_56 = arith.constant 0 : i32
    %74 = tpu.memref_slice %arg5[%c4_i32_55, %c0_i32_56] : memref<8x128xf32, #tpu.memory_space<vmem>> -> memref<1x128xf32, #tpu.memory_space<vmem>>
    %75 = tpu.memref_slice %arg6[%c4_i32_52] : memref<8x!tpu.dma_semaphore, #tpu.memory_space<semaphore_mem>> -> memref<1x!tpu.dma_semaphore, #tpu.memory_space<semaphore_mem>>
    %76 = tpu.memref_squeeze %75 : memref<1x!tpu.dma_semaphore, #tpu.memory_space<semaphore_mem>> -> memref<!tpu.dma_semaphore, #tpu.memory_space<semaphore_mem>>
    tpu.wait_dma2 semaphore(%76 : memref<!tpu.dma_semaphore, #tpu.memory_space<semaphore_mem>>) src(%73 : memref<1x128xf32, #tpu.memory_space<any>>) dst(%74 : memref<1x128xf32, #tpu.memory_space<vmem>>)
    %c5_i32_57 = arith.constant 5 : i32
    %c0_i32_58 = arith.constant 0 : i32
    %c0_i32_59 = arith.constant 0 : i32
    %77 = tpu.memref_slice %arg2[%c0_i32_58, %c0_i32_59] : memref<64x128xf32, #tpu.memory_space<any>> -> memref<1x128xf32, #tpu.memory_space<any>>
    %c5_i32_60 = arith.constant 5 : i32
    %c0_i32_61 = arith.constant 0 : i32
    %78 = tpu.memref_slice %arg5[%c5_i32_60, %c0_i32_61] : memref<8x128xf32, #tpu.memory_space<vmem>> -> memref<1x128xf32, #tpu.memory_space<vmem>>
    %79 = tpu.memref_slice %arg6[%c5_i32_57] : memref<8x!tpu.dma_semaphore, #tpu.memory_space<semaphore_mem>> -> memref<1x!tpu.dma_semaphore, #tpu.memory_space<semaphore_mem>>
    %80 = tpu.memref_squeeze %79 : memref<1x!tpu.dma_semaphore, #tpu.memory_space<semaphore_mem>> -> memref<!tpu.dma_semaphore, #tpu.memory_space<semaphore_mem>>
    tpu.wait_dma2 semaphore(%80 : memref<!tpu.dma_semaphore, #tpu.memory_space<semaphore_mem>>) src(%77 : memref<1x128xf32, #tpu.memory_space<any>>) dst(%78 : memref<1x128xf32, #tpu.memory_space<vmem>>)
    %c6_i32_62 = arith.constant 6 : i32
    %c0_i32_63 = arith.constant 0 : i32
    %c0_i32_64 = arith.constant 0 : i32
    %81 = tpu.memref_slice %arg2[%c0_i32_63, %c0_i32_64] : memref<64x128xf32, #tpu.memory_space<any>> -> memref<1x128xf32, #tpu.memory_space<any>>
    %c6_i32_65 = arith.constant 6 : i32
    %c0_i32_66 = arith.constant 0 : i32
    %82 = tpu.memref_slice %arg5[%c6_i32_65, %c0_i32_66] : memref<8x128xf32, #tpu.memory_space<vmem>> -> memref<1x128xf32, #tpu.memory_space<vmem>>
    %83 = tpu.memref_slice %arg6[%c6_i32_62] : memref<8x!tpu.dma_semaphore, #tpu.memory_space<semaphore_mem>> -> memref<1x!tpu.dma_semaphore, #tpu.memory_space<semaphore_mem>>
    %84 = tpu.memref_squeeze %83 : memref<1x!tpu.dma_semaphore, #tpu.memory_space<semaphore_mem>> -> memref<!tpu.dma_semaphore, #tpu.memory_space<semaphore_mem>>
    tpu.wait_dma2 semaphore(%84 : memref<!tpu.dma_semaphore, #tpu.memory_space<semaphore_mem>>) src(%81 : memref<1x128xf32, #tpu.memory_space<any>>) dst(%82 : memref<1x128xf32, #tpu.memory_space<vmem>>)
    %c7_i32_67 = arith.constant 7 : i32
    %c0_i32_68 = arith.constant 0 : i32
    %c0_i32_69 = arith.constant 0 : i32
    %85 = tpu.memref_slice %arg2[%c0_i32_68, %c0_i32_69] : memref<64x128xf32, #tpu.memory_space<any>> -> memref<1x128xf32, #tpu.memory_space<any>>
    %c7_i32_70 = arith.constant 7 : i32
    %c0_i32_71 = arith.constant 0 : i32
    %86 = tpu.memref_slice %arg5[%c7_i32_70, %c0_i32_71] : memref<8x128xf32, #tpu.memory_space<vmem>> -> memref<1x128xf32, #tpu.memory_space<vmem>>
    %87 = tpu.memref_slice %arg6[%c7_i32_67] : memref<8x!tpu.dma_semaphore, #tpu.memory_space<semaphore_mem>> -> memref<1x!tpu.dma_semaphore, #tpu.memory_space<semaphore_mem>>
    %88 = tpu.memref_squeeze %87 : memref<1x!tpu.dma_semaphore, #tpu.memory_space<semaphore_mem>> -> memref<!tpu.dma_semaphore, #tpu.memory_space<semaphore_mem>>
    tpu.wait_dma2 semaphore(%88 : memref<!tpu.dma_semaphore, #tpu.memory_space<semaphore_mem>>) src(%85 : memref<1x128xf32, #tpu.memory_space<any>>) dst(%86 : memref<1x128xf32, #tpu.memory_space<vmem>>)
    %c0 = arith.constant 0 : index
    %c0_72 = arith.constant 0 : index
    %89 = vector.load %arg5[%c0, %c0_72] : memref<8x128xf32, #tpu.memory_space<vmem>>, vector<8x128xf32>
    %c0_73 = arith.constant 0 : index
    %c0_74 = arith.constant 0 : index
    %90 = vector.load %arg3[%c0_73, %c0_74] : memref<8x128xf32, #tpu.memory_space<vmem>>, vector<8x128xf32>
    %91 = arith.addf %89, %90 : vector<8x128xf32>
    %c0_75 = arith.constant 0 : index
    %c0_76 = arith.constant 0 : index
    %92 = vector.load %arg4[%c0_75, %c0_76] : memref<8x128xf32, #tpu.memory_space<vmem>>, vector<8x128xf32>
    tpu.vector_store %arg4[%c0_75, %c0_76], %91 {strides = array<i32>} : memref<8x128xf32, #tpu.memory_space<vmem>>, vector<8x128xf32>,
    return
  }
  func.func @transform_1(%arg0: i32, %arg1: memref<32xi32, #tpu.memory_space<smem>>) -> (i32, i32) {
    %c2_i32 = arith.constant 2 : i32
    %c0_i32 = arith.constant 0 : i32
    %0 = arith.cmpi eq, %c2_i32, %c0_i32 : i32
    %c1_i32 = arith.constant 1 : i32
    %1 = arith.select %0, %c1_i32, %c2_i32 : i32
    %2 = arith.remsi %arg0, %1 : i32
    %c0_i32_0 = arith.constant 0 : i32
    %3 = arith.cmpi ne, %2, %c0_i32_0 : i32
    %c0_i32_1 = arith.constant 0 : i32
    %4 = arith.cmpi slt, %2, %c0_i32_1 : i32
    %c0_i32_2 = arith.constant 0 : i32
    %5 = arith.cmpi slt, %1, %c0_i32_2 : i32
    %6 = arith.xori %4, %5 : i1
    %7 = arith.andi %6, %3 : i1
    %8 = arith.addi %2, %1 : i32
    %9 = arith.select %7, %8, %2 : i32
    %c0_i32_3 = arith.constant 0 : i32
    %c0_i32_4 = arith.constant 0 : i32
    return %9, %c0_i32_3 : i32, i32
  }
  func.func @transform_2(%arg0: i32, %arg1: memref<32xi32, #tpu.memory_space<smem>>) -> (i32, i32) {
    %c0_i32 = arith.constant 0 : i32
    %c0_i32_0 = arith.constant 0 : i32
    return %arg0, %c0_i32 : i32, i32
  }
}

</mosaic_0001>

<bundles_post_ra>
// kernel: tpu_custom_call.1
= control target key start
LH: loop header
LB: loop body
LE: loop exit
PB: predicated region body
PF: predicated region fallthrough
CT: control target
= control target key end

     0   :  { %s1331_s0 = inlined_call_operand.hbm [shape: s32[32], index: 0, kind: input, shape index: {}]   ;;  %s1332_s1 = inlined_call_operand.hbm [shape: f32[64,128], index: 1, kind: input, shape index: {}]   ;;  %s1333_s2 = inlined_call_operand.hbm [shape: f32[64,128], index: 2, kind: input, shape index: {}]   ;;  %s1334_s3 = inlined_call_operand.hbm [shape: f32[32,128], index: 3, kind: output, shape index: {}]  }
   0x1   :  { %1340 = sst [smem:[#allocation44_spill]] %s1333_s2  ;;  %s613_s14 = scalar_lea.hbm %s1331_s0, 16 }
   0x2   :  { %p614_p0 = scmp.ne.s32.totalorder %s1331_s0, %s613_s14  ;;  %p617_p1 = scmp.lt.u32.totalorder %s613_s14, %s1331_s0 }
   0x4   :  { %p619_p2 = pnand %p617_p1, %p614_p0 }
   0x6   :  { %622 = shalt.err (!%p619_p2)  }
   0x7   :  { %s955_s19 = smov [#allocation5]  }
   0x8   :  { %9 = dma.hbm_to_smem %s1331_s0, 16, %s955_s19, [#allocation4] }
   0x9   :  { %901 = dma.done.wait [#allocation4], 16 }
   0xa   :  { %902 = vsyncadd [#allocation4], 4294967280 }
   0xb   :  { %11 = sfence }
   0xc   :  { %12 = vsyncpa [#allocation7], 0 }
   0xd   :  { %14 = vsyncpa [#allocation7 + $0x1], 0 }
   0xe   :  { %15 = vsyncpa [#allocation8], 0 }
   0xf   :  { %17 = vsyncpa [#allocation8 + $0x1], 0  ;;  %s998_s22 = smov 0   ;;  %s1000_s23 = smov 0  }
  0x10   :  { %s1002_s24 = smov 0   ;;  %s1004_s25 = smov 0  }
  0x11   :  { %s1006_s26 = smov 0   ;;  %s1008_s27 = smov 0  }
  0x12   :  { %s1010_s0 = smov 0  }
  0x13 LB: > { %1341 = sst [smem:[#allocation39_spill]] %s937_s24  ;;  %s1034_s28 = sadd.s32 4294967295, %s953_s0   ;;  %s953_s0 = sphi %s1010_s0, %s1365_s0   ;;  %s949_s27 = sphi %s1008_s27, %s1362_s27   ;;  %s945_s26 = sphi %s1006_s26, %s1361_s26   ;;  %s941_s25 = sphi %s1004_s25, %s1360_s25   ;;  %s937_s24 = sphi %s1002_s24, %s1359_s24   ;;  %s933_s23 = sphi %s1000_s23, %s1364_s23   ;;  %s929_s22 = sphi %s998_s22, %s1363_s22  }
  0x14   : > { %1342 = sst [smem:[#allocation40_spill]] %s945_s26  ;;  %s496_s29 = sadd.s32 4294967294, %s953_s0  }
  0x15   : > { %1343 = sst [smem:[#allocation41_spill]] %s949_s27  ;;  %s1038_s30 = sadd.s32 1, %s953_s0  }
  0x16   : > { %p27_p3 = scmp.lt.s32.totalorder %s953_s0, 0  ;;  %s28_s4 = ssub.s32 0, %s953_s0 }
  0x17   : > { %p39_p4 = scmp.lt.s32.totalorder %s1038_s30, 0  ;;  %s497_s5 = smin.u32 %s953_s0, %s28_s4 }
  0x18   : > { %s40_s6 = ssub.s32 0, %s1038_s30  ;;  %s30_s7 = sand.u32 1, %s497_s5  }
  0x19   : > { %s500_s8 = smin.u32 %s40_s6, %s1038_s30  ;;  %s31_s9 = ssub.s32 0, %s30_s7 }
  0x1a   : > { %s42_s10 = sand.u32 1, %s500_s8   ;;  %s1367_s9 = smov (!%p27_p3, %s31_s9), %s30_s7 }
  0x1b   : > { %s43_s11 = ssub.s32 0, %s42_s10  ;;  %s54_s12 = sadd.s32 1, %s949_s27 }
  0x1c   : > { %p499_p5 = scmp.lt.s32.totalorder %s1367_s9, 0  ;;  %s37_s13 = sadd.s32 2, %s1367_s9 }
  0x1d   : > { %s1369_s11 = smov (!%p39_p4, %s43_s11), %s42_s10  ;;  %p61_p7 = scmp.ne.s32.totalorder %s949_s27, %s945_s26 }
  0x1e   : > { %s1371_s13 = smov (!%p499_p5, %s37_s13), %s1367_s9  ;;  %p502_p6 = scmp.lt.s32.totalorder %s1369_s11, 0 }
  0x1f   : > { %s49_s14 = sadd.s32 2, %s1369_s11  ;;  %p62_p8 = scmp.eq.s32.totalorder %s953_s0, 0 }
  0x20   : > { %s1373_s14 = smov (!%p502_p6, %s49_s14), %s1369_s11  ;;  %p67_p10 = scmp.ne.s32.totalorder %s945_s26, %s941_s25 }
  0x21   : > { %p1050_p9 = por %p62_p8, %p61_p7  ;;  %s51_s16 = ssub.s32 %s1371_s13, %s1373_s14 }
  0x22   : > { %p68_p11 = scmp.eq.s32.totalorder %s1034_s28, 0  ;;  %p52_p12 = scmp.eq.s32.totalorder %s51_s16, 0 }
  0x23   : > { %s77_s17 = ssub.s32 %s953_s0, %s1038_s30  ;;  %s80_s20 = sadd.s32 1, %s937_s24 }
  0x24   : > { %p1059_p13 = por %p68_p11, %p67_p10  ;;  %p78_p0 = scmp.eq.s32.totalorder %s77_s17, 0 }
  0x25   : > { %s1064_s19 = scalar_select %p52_p12, %s949_s27, %s54_s12  }
  0x26   : > { %p90_p1 = scmp.ne.s32.totalorder %s937_s24, %s933_s23  ;;  %p91_p2 = scmp.eq.s32.totalorder %s1034_s28, 3 }
  0x27   : > { %1346 = sst [smem:[#allocation42_spill]] %s1064_s19  ;;  %p96_p3 = scmp.ne.s32.totalorder %s933_s23, %s929_s22 }
  0x28   : > { %s1070_s21 = scalar_select %p78_p0, %s937_s24, %s80_s20  }
  0x29   : > { %p97_p4 = scmp.eq.s32.totalorder %s496_s29, 3  ;;  %p1077_p5 = por %p91_p2, %p90_p1 }
  0x2a   : > { %1347 = sst [smem:[#allocation43_spill]] %s1070_s21  ;;  %p546_p6 = scmp.lt.s32.totalorder %s953_s0, 4 }
  0x2b   : > { %s1348_s25 = scalar_select %p1077_p5, 1, 0 }
  0x2c   : > { %p1082_p7 = por %p97_p4, %p96_p3  ;;  %s117_s5 = sand.u32 1, %s949_s27  }
  0x2d   : > { %s505_s6 = sshll.u32 %s117_s5, 3  ;;  %s509_s7 = sshll.u32 %s1371_s13, 7 }
  0x2e   : > { %s1349_s4 = scalar_select %p1082_p7, 1, 0 }
  0x2f   : > { %s1350_s2 = sld [smem:[#allocation44_spill]]  ;;  %s121_s29 = scalar_lea.vmem [#allocation6], %s505_s6 }
  0x30   : > { %s140_s11 = sshll.u32 %s121_s29, 4  ;;  %p1096_p8 = pnand %p546_p6, %p1050_p9  ;;  %s1092_s11 = int_to_ptr.vmem [resolvable:$true] %s140_s11 }
  0x31   : > { %s118_s13 = scalar_lea.sflag [#allocation7], %s117_s5 }
  0x32   : > { %p625_p0 = pneg %p1096_p8 }
  0x35   : > { %s1090_s10 = scalar_lea.hbm %s1350_s2, %s509_s7  ;;  %s628_s15 = scalar_lea.hbm %s1350_s2, 1024 }
  0x36   : > { %s623_s14 = scalar_lea.hbm %s1090_s10, 128  ;;  %p629_p9 = scmp.lt.u32.totalorder %s1090_s10, %s1350_s2 }
  0x37   : > { %p624_p12 = scmp.ne.s32.totalorder %s1090_s10, %s623_s14  ;;  %p630_p3 = scmp.lt.u32.totalorder %s628_s15, %s623_s14 }
  0x38   : > { %p632_p6 = scmp.lt.u32.totalorder %s623_s14, %s1090_s10 }
  0x39   : > { %p626_p1 = pnand %p625_p0, %p624_p12  ;;  %p631_p4 = por %p630_p3, %p629_p9 }
  0x3b   : > { %p627_p2 = pneg %p626_p1  ;;  %p633_p10 = por %p632_p6, %p631_p4 }
  0x3d   : > { %p634_p11 = pnand %p633_p10, %p627_p2 }
  0x3f   : > { %637 = shalt.err (!%p634_p11)
}
  0x40   : > { %s638_s5 = scalar_lea.vmem %s1092_s11, 128  ;;  %s956_s7 = smov [#allocation6]  }
  0x41   : > { %p639_p12 = scmp.ne.s32.totalorder %s1092_s11, %s638_s5  ;;  %s643_s8 = sshll.u32 %s956_s7, 4  ;;  %s644_s8 = int_to_ptr.vmem [resolvable:$false] %s643_s8 }
  0x42   : > { %s645_s9 = scalar_lea.vmem %s644_s8, 256  ;;  %p646_p5 = scmp.lt.s32.totalorder %s1092_s11, %s644_s8 }
  0x43   : > { %p641_p1 = pnand %p639_p12, %p625_p0  ;;  %p647_p9 = scmp.lt.s32.totalorder %s645_s9, %s638_s5 }
  0x45   : > { %p642_p7 = pneg %p641_p1  ;;  %p648_p3 = por %p647_p9, %p646_p5 }
  0x47   : > { %p649_p4 = pnand %p648_p3, %p642_p7 }
  0x49   : > { %652 = shalt.err (!%p649_p4)
}
  0x4a   : > { %541 = dma.hbm_to_vmem [thread:$0]  (!%p1096_p8), %s1090_s10, 128, %s1092_s11, %s118_s13  }
  0x4b   : > { %p1352_p10 = scmp.lt.s32.totalorder %s953_s0, 5  ;;  %p1353_p11 = scmp.ge.s32.totalorder %s953_s0, 1 }
  0x4d   : > { %p146_p0 = pnand %p1353_p11, %p1352_p10 }
  0x4e   : > { %s151_s29 = sand.u32 (!%p146_p0), 1, %s945_s26  }
  0x4f   : > { %149 = sbr.rel (%p146_p0) target bundleno = 310 (0x136), region = 24  ;;  %s1132_s14 = sshll.u32 (!%p146_p0), %s151_s29, 3 }
  0x50   : > { %s152_s16 = scalar_lea.sflag (!%p146_p0), [#allocation7], %s151_s29 }
  0x56   : > { %904 = dma.done.wait (%p1059_p13), %s152_s16, 128  }
  0x57   : > { %906 = vsyncadd (%p1059_p13), %s152_s16, 4294967168  ;;  %s1336_s10 = sand.u32 1, %s933_s23   ;;  %s1141_s11 = sshll.u32 %s1034_s28, 3 }
  0x58   : > { %s1145_s12 = sshll.u32 %s1336_s10, 3  ;;  %s187_s13 = sld [smem:[#allocation5 + %s1141_s11]] }
  0x59   : > { %s957_s15 = smov [#allocation2]   ;;  %s201_s6 = sadd.s32 1, %s1141_s11 }
  0x5a   : > { %s197_s20 = sshll.u32 %s957_s15, 4  ;;  %s1151_s18 = sld [smem:[#allocation5 + %s201_s6]]  ;;  %s1149_s20 = int_to_ptr.vmem [resolvable:$true] %s197_s20 }
  0x5b   : > { %s218_s5 = sadd.s32 2, %s1141_s11  ;;  %s958_s7 = smov [#allocation2 + $0x1]  }
  0x5c   : > { %s214_s8 = sshll.u32 %s958_s7, 4  ;;  %s1154_s9 = sld [smem:[#allocation5 + %s218_s5]]  ;;  %s1156_s8 = int_to_ptr.vmem [resolvable:$true] %s214_s8 }
  0x5d   : > { %s1164_s27 = scalar_lea.hbm %s1332_s1, 1024 }
  0x5e   : > { %s514_s29 = sshll.u32 %s187_s13, 4 }
  0x5f   : > { %s189_s10 = scalar_lea.hbm %s1332_s1, %s514_s29 }
  0x60   : > { %s653_s2 = scalar_lea.hbm %s189_s10, 16  ;;  %p656_p5 = scmp.lt.u32.totalorder %s189_s10, %s1332_s1 }
  0x61   : > { %p654_p13 = scmp.ne.s32.totalorder %s189_s10, %s653_s2  ;;  %p657_p7 = scmp.lt.u32.totalorder %s1164_s27, %s653_s2 }
  0x62   : > { %p659_p2 = scmp.lt.u32.totalorder %s653_s2, %s189_s10 }
  0x63   : > { %p658_p8 = por %p657_p7, %p656_p5 }
  0x65   : > { %p660_p6 = por %p659_p2, %p658_p8 }
  0x67   : > { %p661_p12 = pnand %p660_p6, %p654_p13 }
  0x69   : > { %664 = shalt.err (!%p661_p12)  }
  0x6a   : > { %s665_s17 = scalar_lea.vmem %s1149_s20, 16  ;;  %s1173_s19 = scalar_lea.vmem %s1149_s20, 128 }
  0x6b   : > { %p666_p1 = scmp.ne.s32.totalorder %s1149_s20, %s665_s17  ;;  %p670_p9 = scmp.lt.s32.totalorder %s1149_s20, %s1149_s20 }
  0x6c   : > { %p671_p3 = scmp.lt.s32.totalorder %s1173_s19, %s665_s17 }
  0x6e   : > { %p672_p4 = por %p671_p3, %p670_p9 }
  0x70   : > { %p673_p10 = pnand %p672_p4, %p666_p1 }
  0x72   : > { %676 = shalt.err (!%p673_p10)  }
  0x73   : > { %200 = dma.hbm_to_vmem [thread:$0]  %s189_s10, 16, %s1149_s20, [#allocation3] }
  0x74   : > { %s515_s2 = sshll.u32 %s1151_s18, 4  ;;  %s959_s26 = smov [#allocation2 + $0x2]  }
  0x75   : > { %s231_s13 = sshll.u32 %s959_s26, 4  ;;  %s204_s29 = scalar_lea.hbm %s1332_s1, %s515_s2  ;;  %s1183_s13 = int_to_ptr.vmem [resolvable:$true] %s231_s13 }
  0x76   : > { %s677_s16 = scalar_lea.hbm %s204_s29, 16  ;;  %p680_p0 = scmp.lt.u32.totalorder %s204_s29, %s1332_s1 }
  0x77   : > { %p678_p11 = scmp.ne.s32.totalorder %s204_s29, %s677_s16  ;;  %p681_p13 = scmp.lt.u32.totalorder %s1164_s27, %s677_s16 }
  0x78   : > { %p683_p7 = scmp.lt.u32.totalorder %s677_s16, %s204_s29 }
  0x79   : > { %p682_p5 = por %p681_p13, %p680_p0 }
  0x7b   : > { %p684_p8 = por %p683_p7, %p682_p5 }
  0x7d   : > { %p685_p2 = pnand %p684_p8, %p678_p11 }
  0x7f   : > { %688 = shalt.err (!%p685_p2)  }
  0x80   : > { %s689_s10 = scalar_lea.vmem %s1156_s8, 16  ;;  %p694_p12 = scmp.lt.s32.totalorder %s1156_s8, %s1149_s20 }
  0x81   : > { %p690_p6 = scmp.ne.s32.totalorder %s1156_s8, %s689_s10  ;;  %p695_p1 = scmp.lt.s32.totalorder %s1173_s19, %s689_s10 }
  0x83   : > { %p696_p9 = por %p695_p1, %p694_p12 }
  0x85   : > { %p697_p3 = pnand %p696_p9, %p690_p6 }
  0x87   : > { %700 = shalt.err (!%p697_p3)  }
  0x88   : > { %217 = dma.hbm_to_vmem [thread:$0]  %s204_s29, 16, %s1156_s8, [#allocation3 + $0x1] }
  0x89   : > { %s516_s18 = sshll.u32 %s1154_s9, 4  ;;  %s235_s17 = sadd.s32 3, %s1141_s11 }
  0x8a   : > { %s221_s5 = scalar_lea.hbm %s1332_s1, %s516_s18  ;;  %s1200_s7 = sld [smem:[#allocation5 + %s235_s17]] }
  0x8b   : > { %s701_s16 = scalar_lea.hbm %s221_s5, 16  ;;  %p704_p10 = scmp.lt.u32.totalorder %s221_s5, %s1332_s1 }
  0x8c   : > { %p702_p4 = scmp.ne.s32.totalorder %s221_s5, %s701_s16  ;;  %p705_p11 = scmp.lt.u32.totalorder %s1164_s27, %s701_s16 }
  0x8d   : > { %p707_p13 = scmp.lt.u32.totalorder %s701_s16, %s221_s5 }
  0x8e   : > { %p706_p0 = por %p705_p11, %p704_p10 }
  0x90   : > { %p708_p5 = por %p707_p13, %p706_p0 }
  0x92   : > { %p709_p7 = pnand %p708_p5, %p702_p4 }
  0x94   : > { %712 = shalt.err (!%p709_p7)  }
  0x95   : > { %s713_s8 = scalar_lea.vmem %s1183_s13, 16  ;;  %p718_p2 = scmp.lt.s32.totalorder %s1183_s13, %s1149_s20 }
  0x96   : > { %p714_p8 = scmp.ne.s32.totalorder %s1183_s13, %s713_s8  ;;  %p719_p6 = scmp.lt.s32.totalorder %s1173_s19, %s713_s8 }
  0x98   : > { %p720_p12 = por %p719_p6, %p718_p2 }
  0x9a   : > { %p721_p1 = pnand %p720_p12, %p714_p8 }
  0x9c   : > { %724 = shalt.err (!%p721_p1)  }
  0x9d   : > { %234 = dma.hbm_to_vmem [thread:$0]  %s221_s5, 16, %s1183_s13, [#allocation3 + $0x2] }
  0x9e   : > { %s252_s9 = sadd.s32 4, %s1141_s11  ;;  %s960_s29 = smov [#allocation2 + $0x3]  }
  0x9f   : > { %s248_s10 = sshll.u32 %s960_s29, 4  ;;  %s253_s18 = sld [smem:[#allocation5 + %s252_s9]]  ;;  %s249_s10 = int_to_ptr.vmem [resolvable:$true] %s248_s10 }
  0xa0   : > { %s961_s17 = smov [#allocation2 + $0x4]   ;;  %s269_s26 = sadd.s32 5, %s1141_s11 }
  0xa1   : > { %s265_s2 = sshll.u32 %s961_s17, 4  ;;  %s517_s16 = sshll.u32 %s1200_s7, 4  ;;  %s1215_s2 = int_to_ptr.vmem [resolvable:$true] %s265_s2 }
  0xa2   : > { %s238_s8 = scalar_lea.hbm %s1332_s1, %s517_s16  ;;  %s1220_s21 = sld [smem:[#allocation5 + %s269_s26]] }
  0xa3   : > { %s725_s24 = scalar_lea.hbm %s238_s8, 16  ;;  %p728_p3 = scmp.lt.u32.totalorder %s238_s8, %s1332_s1 }
  0xa4   : > { %p726_p9 = scmp.ne.s32.totalorder %s238_s8, %s725_s24  ;;  %p729_p4 = scmp.lt.u32.totalorder %s1164_s27, %s725_s24 }
  0xa5   : > { %p731_p11 = scmp.lt.u32.totalorder %s725_s24, %s238_s8 }
  0xa6   : > { %p730_p10 = por %p729_p4, %p728_p3 }
  0xa8   : > { %p732_p0 = por %p731_p11, %p730_p10 }
  0xaa   : > { %p733_p13 = pnand %p732_p0, %p726_p9 }
  0xac   : > { %736 = shalt.err (!%p733_p13)  }
  0xad   : > { %s737_s7 = scalar_lea.vmem %s249_s10, 16  ;;  %p742_p7 = scmp.lt.s32.totalorder %s249_s10, %s1149_s20 }
  0xae   : > { %p738_p5 = scmp.ne.s32.totalorder %s249_s10, %s737_s7  ;;  %p743_p8 = scmp.lt.s32.totalorder %s1173_s19, %s737_s7 }
  0xb0   : > { %p744_p2 = por %p743_p8, %p742_p7 }
  0xb2   : > { %p745_p6 = pnand %p744_p2, %p738_p5 }
  0xb4   : > { %748 = shalt.err (!%p745_p6)  }
  0xb5   : > { %251 = dma.hbm_to_vmem [thread:$0]  %s238_s8, 16, %s249_s10, [#allocation3 + $0x3] }
  0xb6   : > { %s518_s9 = sshll.u32 %s253_s18, 4  ;;  %s962_s24 = smov [#allocation2 + $0x5]  }
  0xb7   : > { %s255_s26 = scalar_lea.hbm %s1332_s1, %s518_s9  ;;  %s282_s16 = sshll.u32 %s962_s24, 4  ;;  %s283_s16 = int_to_ptr.vmem [resolvable:$true] %s282_s16 }
  0xb8   : > { %s749_s15 = scalar_lea.hbm %s255_s26, 16  ;;  %p752_p1 = scmp.lt.u32.totalorder %s255_s26, %s1332_s1 }
  0xb9   : > { %p750_p12 = scmp.ne.s32.totalorder %s255_s26, %s749_s15  ;;  %p753_p9 = scmp.lt.u32.totalorder %s1164_s27, %s749_s15 }
  0xba   : > { %p755_p4 = scmp.lt.u32.totalorder %s749_s15, %s255_s26 }
  0xbb   : > { %p754_p3 = por %p753_p9, %p752_p1 }
  0xbd   : > { %p756_p10 = por %p755_p4, %p754_p3 }
  0xbf   : > { %p757_p11 = pnand %p756_p10, %p750_p12 }
  0xc1   : > { %760 = shalt.err (!%p757_p11)  }
  0xc2   : > { %s761_s10 = scalar_lea.vmem %s1215_s2, 16  ;;  %p766_p13 = scmp.lt.s32.totalorder %s1215_s2, %s1149_s20 }
  0xc3   : > { %p762_p0 = scmp.ne.s32.totalorder %s1215_s2, %s761_s10  ;;  %p767_p5 = scmp.lt.s32.totalorder %s1173_s19, %s761_s10 }
  0xc5   : > { %p768_p7 = por %p767_p5, %p766_p13 }
  0xc7   : > { %p769_p8 = pnand %p768_p7, %p762_p0 }
  0xc9   : > { %772 = shalt.err (!%p769_p8)  }
  0xca   : > { %268 = dma.hbm_to_vmem [thread:$0]  %s255_s26, 16, %s1215_s2, [#allocation3 + $0x4] }
  0xcb   : > { %s286_s18 = sadd.s32 6, %s1141_s11  ;;  %s519_s8 = sshll.u32 %s1220_s21, 4 }
  0xcc   : > { %s287_s5 = sld [smem:[#allocation5 + %s286_s18]]  ;;  %s272_s29 = scalar_lea.hbm %s1332_s1, %s519_s8 }
  0xcd   : > { %s773_s17 = scalar_lea.hbm %s272_s29, 16  ;;  %p776_p6 = scmp.lt.u32.totalorder %s272_s29, %s1332_s1 }
  0xce   : > { %p774_p2 = scmp.ne.s32.totalorder %s272_s29, %s773_s17  ;;  %p777_p12 = scmp.lt.u32.totalorder %s1164_s27, %s773_s17 }
  0xcf   : > { %p779_p9 = scmp.lt.u32.totalorder %s773_s17, %s272_s29 }
  0xd0   : > { %p778_p1 = por %p777_p12, %p776_p6 }
  0xd2   : > { %p780_p3 = por %p779_p9, %p778_p1 }
  0xd4   : > { %p781_p4 = pnand %p780_p3, %p774_p2 }
  0xd6   : > { %784 = shalt.err (!%p781_p4)  }
  0xd7   : > { %s785_s2 = scalar_lea.vmem %s283_s16, 16  ;;  %p790_p11 = scmp.lt.s32.totalorder %s283_s16, %s1149_s20 }
  0xd8   : > { %p786_p10 = scmp.ne.s32.totalorder %s283_s16, %s785_s2  ;;  %p791_p0 = scmp.lt.s32.totalorder %s1173_s19, %s785_s2 }
  0xda   : > { %p792_p13 = por %p791_p0, %p790_p11 }
  0xdc   : > { %p793_p5 = pnand %p792_p13, %p786_p10 }
  0xde   : > { %796 = shalt.err (!%p793_p5)  }
  0xdf   : > { %285 = dma.hbm_to_vmem [thread:$0]  %s272_s29, 16, %s283_s16, [#allocation3 + $0x5] }
  0xe0   : > { %s963_s21 = smov [#allocation2 + $0x6]   ;;  %s303_s6 = sadd.s32 7, %s1141_s11 }
  0xe1   : > { %s299_s26 = sshll.u32 %s963_s21, 4  ;;  %s304_s13 = sld [smem:[#allocation5 + %s303_s6]]  ;;  %s300_s26 = int_to_ptr.vmem [resolvable:$true] %s299_s26 }
  0xe2   : > { %s520_s10 = sshll.u32 %s287_s5, 4  ;;  %s964_s18 = smov [#allocation2 + $0x7]  }
  0xe3   : > { %s316_s8 = sshll.u32 %s964_s18, 4  ;;  %s289_s17 = scalar_lea.hbm %s1332_s1, %s520_s10  ;;  %s317_s8 = int_to_ptr.vmem [resolvable:$true] %s316_s8 }
  0xe4   : > { %s797_s24 = scalar_lea.hbm %s289_s17, 16  ;;  %p800_p8 = scmp.lt.u32.totalorder %s289_s17, %s1332_s1 }
  0xe5   : > { %p798_p7 = scmp.ne.s32.totalorder %s289_s17, %s797_s24  ;;  %p801_p2 = scmp.lt.u32.totalorder %s1164_s27, %s797_s24 }
  0xe6   : > { %p803_p12 = scmp.lt.u32.totalorder %s797_s24, %s289_s17 }
  0xe7   : > { %p802_p6 = por %p801_p2, %p800_p8 }
  0xe9   : > { %p804_p1 = por %p803_p12, %p802_p6 }
  0xeb   : > { %p805_p9 = pnand %p804_p1, %p798_p7 }
  0xed   : > { %808 = shalt.err (!%p805_p9)  }
  0xee   : > { %s809_s11 = scalar_lea.vmem %s300_s26, 16  ;;  %p814_p4 = scmp.lt.s32.totalorder %s300_s26, %s1149_s20 }
  0xef   : > { %p810_p3 = scmp.ne.s32.totalorder %s300_s26, %s809_s11  ;;  %p815_p10 = scmp.lt.s32.totalorder %s1173_s19, %s809_s11 }
  0xf1   : > { %p816_p11 = por %p815_p10, %p814_p4 }
  0xf3   : > { %p817_p0 = pnand %p816_p11, %p810_p3 }
  0xf5   : > { %820 = shalt.err (!%p817_p0)  }
  0xf6   : > { %302 = dma.hbm_to_vmem [thread:$0]  %s289_s17, 16, %s300_s26, [#allocation3 + $0x6] }
  0xf7   : > { %s521_s16 = sshll.u32 %s304_s13, 4 }
  0xf8   : > { %s306_s21 = scalar_lea.hbm %s1332_s1, %s521_s16 }
  0xf9   : > { %s821_s6 = scalar_lea.hbm %s306_s21, 16  ;;  %p824_p5 = scmp.lt.u32.totalorder %s306_s21, %s1332_s1 }
  0xfa   : > { %p822_p13 = scmp.ne.s32.totalorder %s306_s21, %s821_s6  ;;  %p825_p7 = scmp.lt.u32.totalorder %s1164_s27, %s821_s6 }
  0xfb   : > { %p827_p2 = scmp.lt.u32.totalorder %s821_s6, %s306_s21 }
  0xfc   : > { %p826_p8 = por %p825_p7, %p824_p5 }
  0xfe   : > { %p828_p6 = por %p827_p2, %p826_p8 }
 0x100   : > { %p829_p12 = pnand %p828_p6, %p822_p13 }
 0x102   : > { %832 = shalt.err (!%p829_p12)  }
 0x103   : > { %s833_s26 = scalar_lea.vmem %s317_s8, 16  ;;  %p838_p9 = scmp.lt.s32.totalorder %s317_s8, %s1149_s20 }
 0x104   : > { %p834_p1 = scmp.ne.s32.totalorder %s317_s8, %s833_s26  ;;  %p839_p3 = scmp.lt.s32.totalorder %s1173_s19, %s833_s26 }
 0x106   : > { %p840_p4 = por %p839_p3, %p838_p9 }
 0x108   : > { %p841_p10 = pnand %p840_p4, %p834_p1 }
 0x10a   : > { %844 = shalt.err (!%p841_p10)  }
 0x10b   : > { %319 = dma.hbm_to_vmem [thread:$0]  %s306_s21, 16, %s317_s8, [#allocation3 + $0x7] }
 0x10c   : > { %s173_s13 = scalar_lea.vmem [#allocation9], %s1145_s12 }
 0x10d   : > { %907 = dma.done.wait [#allocation3], 16 }
 0x10e   : > { %908 = vsyncadd [#allocation3], 4294967280 }
 0x10f   : > { %909 = dma.done.wait [#allocation3 + $0x1], 16 }
 0x110   : > { %910 = vsyncadd [#allocation3 + $0x1], 4294967280 }
 0x111   : > { %911 = dma.done.wait [#allocation3 + $0x2], 16 }
 0x112   : > { %912 = vsyncadd [#allocation3 + $0x2], 4294967280 }
 0x113   : > { %913 = dma.done.wait [#allocation3 + $0x3], 16 }
 0x114   : > { %914 = vsyncadd [#allocation3 + $0x3], 4294967280 }
 0x115   : > { %915 = dma.done.wait [#allocation3 + $0x4], 16 }
 0x116   : > { %916 = vsyncadd [#allocation3 + $0x4], 4294967280 }
 0x117   : > { %917 = dma.done.wait [#allocation3 + $0x5], 16 }
 0x118   : > { %918 = vsyncadd [#allocation3 + $0x5], 4294967280 }
 0x119   : > { %919 = dma.done.wait [#allocation3 + $0x6], 16 }
 0x11a   : > { %920 = vsyncadd [#allocation3 + $0x6], 4294967280 }
 0x11b   : > { %921 = dma.done.wait [#allocation3 + $0x7], 16 }
 0x11c   : > { %922 = vsyncadd [#allocation3 + $0x7], 4294967280  ;;  %s523_s27 = sshll.u32 %s1034_s28, 7  ;;  %s355_s12 = sshll.u32 %s173_s13, 4  ;;  %v337_v0 = vld [vmem:[#allocation2] sm:$0xff]  ;;  %s1280_s12 = int_to_ptr.vmem [resolvable:$true] %s355_s12 }
 0x11d   : > { %s1354_s20 = scalar_lea.vmem [#allocation6], %s1132_s14  ;;  %s1278_s7 = scalar_lea.hbm %s1334_s3, %s523_s27 }
 0x11e   : > { %v338_v1 = vld [vmem:[%s1354_s20] sm:$0xff]  ;;  %s1355_s9 = sand.u32 1, %s933_s23   ;;  %s845_s24 = scalar_lea.vmem %s1280_s12, 128 }
 0x11f   : > { %v339_v2 = vadd.f32 %v338_v1, %v337_v0  ;;  %s342_s17 = scalar_lea.sflag [#allocation8], %s1355_s9  ;;  %p846_p11 = scmp.ne.s32.totalorder %s1280_s12, %s845_s24 }
 0x120   : > { %p1356_p0 = scmp.ne.s32.totalorder %s1348_s25, 0  ;;  %s965_s28 = smov [#allocation9]  }
 0x121   : > { %340 = vst [vmem:[%s173_s13] sm:$0xff] %v339_v2  ;;  %s849_s14 = sshll.u32 %s965_s28, 4  ;;  %s850_s14 = int_to_ptr.vmem [resolvable:$false] %s849_s14 }
 0x122   : > { %p847_p13 = pnand %p846_p11, %p1356_p0  ;;  %s851_s15 = scalar_lea.vmem %s850_s14, 256 }
 0x123   : > { %p852_p7 = scmp.lt.s32.totalorder %s1280_s12, %s850_s14  ;;  %p853_p8 = scmp.lt.s32.totalorder %s851_s15, %s845_s24 }
 0x124   : > { %p848_p5 = pneg %p847_p13 }
 0x125   : > { %p854_p2 = por %p853_p8, %p852_p7 }
 0x127   : > { %p855_p6 = pnand %p854_p2, %p848_p5 }
 0x129   : > { %858 = shalt.err (!%p855_p6)
}
 0x12a   : > { %s859_s2 = scalar_lea.hbm %s1278_s7, 128  ;;  %s863_s5 = scalar_lea.hbm %s1334_s3, 512 }
 0x12b   : > { %p860_p12 = scmp.ne.s32.totalorder %s1278_s7, %s859_s2  ;;  %p864_p3 = scmp.lt.u32.totalorder %s1278_s7, %s1334_s3 }
 0x12c   : > { %p865_p4 = scmp.lt.u32.totalorder %s863_s5, %s859_s2  ;;  %p867_p11 = scmp.lt.u32.totalorder %s859_s2, %s1278_s7 }
 0x12d   : > { %p861_p1 = pnand %p860_p12, %p1356_p0 }
 0x12e   : > { %p866_p10 = por %p865_p4, %p864_p3 }
 0x12f   : > { %p862_p9 = pneg %p861_p1 }
 0x130   : > { %p868_p13 = por %p867_p11, %p866_p10 }
 0x132   : > { %p869_p5 = pnand %p868_p13, %p862_p9 }
 0x134   : > { %872 = shalt.err (!%p869_p5)
}
 0x135   : > { %536 = dma.vmem_to_hbm [thread:$0]  (%p1356_p0), %s1280_s12, 128, %s1278_s7, %s342_s17  }
 0x136 PF: > { %p547_p7 = scmp.ge.s32.totalorder %s953_s0, 2  ;;  %s367_s6 = sand.u32 1, %s929_s22  }
 0x137   : > { %p1357_p8 = scmp.ne.s32.totalorder %s1349_s4, 0  ;;  %s368_s10 = scalar_lea.sflag [#allocation8], %s367_s6 }
 0x139   : > { %p543_p2 = pnand %p547_p7, %p1357_p8 }
 0x13b   : > { %924 = dma.done.wait (!%p543_p2), %s368_s10, 128  }
 0x13c   : > { %926 = vsyncadd (!%p543_p2), %s368_s10, 4294967168  ;;  %s1358_s18 = sld [smem:[#allocation39_spill]]  ;;  %s1359_s24 = sld [smem:[#allocation43_spill]] }
 0x13d   : > { %s1360_s25 = sld [smem:[#allocation40_spill]]  ;;  %s1361_s26 = sld [smem:[#allocation41_spill]] }
 0x13e   : > { %s1362_s27 = sld [smem:[#allocation42_spill]]  ;;  %p20_p0 = scmp.ge.s32.totalorder %s1038_s30, 6  }
 0x13f   : > { %s1363_s22 = smov %s933_s23  ;;  %s1365_s0 = smov %s1038_s30 }
 0x140   :  { %22 = sbr.rel (!%p20_p0) target bundleno = 19 (0x13), region = 130 }
 0x142   : > { %s1364_s23 = smov %s1358_s18 }
 0x147   :  { %373 = vsyncpa [#allocation7], 1 }
 0x148   :  { %375 = vsyncpa [#allocation7 + $0x1], 1 }
 0x149   :  { %376 = vsyncpa [#allocation8], 1 }
 0x14a   :  { %378 = vsyncpa [#allocation8 + $0x1], 1 }
 0x14b   :  { %379 = vsyncmov [#allocation3] }
 0x14e   :  { %s380_s0 = vpop.sfrf %379 }
 0x14f   :  { %p526_p6 = scmp.ne.s32.totalorder %s380_s0, 0 }
 0x151   :  { %384 = shalt.err (%p526_p6)  }
 0x152   :  { %386 = vsyncmov [#allocation3 + $0x1] }
 0x155   :  { %s387_s4 = vpop.sfrf %386 }
 0x156   :  { %p527_p12 = scmp.ne.s32.totalorder %s387_s4, 0 }
 0x158   :  { %391 = shalt.err (%p527_p12)  }
 0x159   :  { %393 = vsyncmov [#allocation3 + $0x2] }
 0x15c   :  { %s394_s13 = vpop.sfrf %393 }
 0x15d   :  { %p528_p1 = scmp.ne.s32.totalorder %s394_s13, 0 }
 0x15f   :  { %398 = shalt.err (%p528_p1)  }
 0x160   :  { %400 = vsyncmov [#allocation3 + $0x3] }
 0x163   :  { %s401_s12 = vpop.sfrf %400 }
 0x164   :  { %p529_p9 = scmp.ne.s32.totalorder %s401_s12, 0 }
 0x166   :  { %405 = shalt.err (%p529_p9)  }
 0x167   :  { %407 = vsyncmov [#allocation3 + $0x4] }
 0x16a   :  { %s408_s1 = vpop.sfrf %407 }
 0x16b   :  { %p530_p3 = scmp.ne.s32.totalorder %s408_s1, 0 }
 0x16d   :  { %412 = shalt.err (%p530_p3)  }
 0x16e   :  { %414 = vsyncmov [#allocation3 + $0x5] }
 0x171   :  { %s415_s3 = vpop.sfrf %414 }
 0x172   :  { %p531_p4 = scmp.ne.s32.totalorder %s415_s3, 0 }
 0x174   :  { %419 = shalt.err (%p531_p4)  }
 0x175   :  { %421 = vsyncmov [#allocation3 + $0x6] }
 0x178   :  { %s422_s22 = vpop.sfrf %421 }
 0x179   :  { %p532_p10 = scmp.ne.s32.totalorder %s422_s22, 0 }
 0x17b   :  { %426 = shalt.err (%p532_p10)  }
 0x17c   :  { %428 = vsyncmov [#allocation3 + $0x7] }
 0x17f   :  { %s429_s23 = vpop.sfrf %428 }
 0x180   :  { %p533_p11 = scmp.ne.s32.totalorder %s429_s23, 0 }
 0x182   :  { %433 = shalt.err (%p533_p11)  }

</bundles_post_ra>
